<compile_context>
chip_gen: v5e
topology: v5e:2x2
jax: 0.10.0
libtpu: 0.0.40
codegen_flags: <defaults>
</compile_context>

<pallas_src>
import functools

import jax
import jax.numpy as jnp
from jax.experimental import pallas as pl
from jax.experimental.pallas import tpu as pltpu

_MiB = 1024 * 1024

# Approximate number of full-block f32 temporaries the kernel materializes
# (used to budget VMEM so Mosaic scratch never blows the limit, esp. bf16 in).
_F32_TEMP_FACTOR = {"max": 0, "avg": 1, "channelwise_conv": 1, "var": 2}


# ---------------------------------------------------------------------------
# Generation-aware tiling
# ---------------------------------------------------------------------------
def _vmem_capacity_bytes():
    try:
        info = pltpu.get_tpu_info()
        cap = int(getattr(info, "vmem_capacity_bytes", 0) or 0)
        if cap > 0:
            return cap
    except Exception:
        pass
    return 64 * _MiB  # conservative fallback: v7x per-TensorCore VMEM


def _pick_tiles(N, C, HW, max_block_elems):
    """x block is (tile_n, C, tile_hw); output block is (tile_n, tile_hw).

    Legality: tile_hw % 128 == 0 or tile_hw == HW; and, because the output is
    a dense 2-D array, tile_n % 8 == 0 or tile_n == N.
    Preference: keep the whole batch per step and tile the spatial axis, so
    the leading (spatial) grid axis carries the parallelism for the v7x
    megacore split even at tiny batch sizes.
    """
    min_hw = HW if HW <= 128 else 128
    max_hw = HW if HW <= 128 else (HW // 128) * 128

    # tile_n candidates, largest first: full N, then multiples of 8.
    cands = [N] + list(range((N // 8) * 8, 0, -8))
    cands = [c for c in dict.fromkeys(cands) if 0 < c <= N]

    tile_n = cands[-1]  # smallest legal, as a fallback for huge C
    for c in cands:
        if c * C * min_hw <= max_block_elems:
            tile_n = c
            break

    if HW <= 128:
        tile_hw = HW  # full extent: always a legal block shape
    else:
        lanes = max(min_hw, (max_block_elems // (tile_n * C) // 128) * 128)
        tile_hw = min(lanes, max_hw)
    return tile_n, tile_hw


def _plan(pool, N, C, HW, itemsize):
    """Pick (tile_n, tile_hw, vmem_limit_bytes) from a VMEM byte budget that
    accounts for double-buffered input blocks plus in-kernel f32 temporaries,
    so each grid step streams a multi-MiB slab (amortizing the ~0.35us/step
    overhead) on every HBM generation (v5e 0.8 TB/s ... v7x 3.2 TB/s)."""
    cap = _vmem_capacity_bytes()
    # Target total VMEM use: ~64 MiB on 128-MiB parts (v5e/v6e), ~48 MiB on
    # v7x (64 MiB physical per TC), always leaving compiler headroom.
    target_total = max(24 * _MiB, min(cap - 16 * _MiB, 64 * _MiB))

    tf = _F32_TEMP_FACTOR[pool]
    bytes_per_elem = 2 * itemsize + 4 * tf          # 2x input bufs + f32 temps
    max_block_elems = (target_total - 2 * _MiB) // bytes_per_elem
    # Beyond ~16 MiB per streaming buffer the per-step overhead is already
    # <2% even at 3.2 TB/s; cap it to keep compile size / regalloc sane.
    max_block_elems = min(max_block_elems, (16 * _MiB) // itemsize)

    tile_n, tile_hw = _pick_tiles(N, C, HW, max_block_elems)

    # Size vmem_limit from what the chosen tiles actually need (with slack),
    # clamped under physical capacity.  Matters on v5e where the scoped
    # default is only 16 MiB.
    block_elems = tile_n * C * tile_hw
    actual = (2 * block_elems * itemsize + 4 * tf * block_elems
              + 2 * tile_n * tile_hw * itemsize + 2 * _MiB)
    vmem_limit = int(min(max(target_total, actual * 5 // 4), cap - 8 * _MiB))
    return tile_n, tile_hw, vmem_limit


# ---------------------------------------------------------------------------
# Kernels
# ---------------------------------------------------------------------------
def _reduce_pool_kernel(x_ref, o_ref, *, mode, n_ch):
    """avg / max / var over channels.
    x_ref: (TILE_N, C, TILE_HW); o_ref: (TILE_N, TILE_HW) -- lane/sublane dense."""
    if mode == "max":
        # max is exact in the native dtype -> skip the f32 upcast.
        o_ref[...] = jnp.max(x_ref[...], axis=1).astype(o_ref.dtype)
    elif mode == "avg":
        x = x_ref[...].astype(jnp.float32)
        o_ref[...] = (jnp.sum(x, axis=1) * jnp.float32(1.0 / n_ch)).astype(o_ref.dtype)
    elif mode == "var":
        # torch.var default: unbiased (correction=1).
        if n_ch == 1:
            # torch returns NaN (0/0) for a single channel.
            o_ref[...] = jnp.full(o_ref.shape, jnp.nan, dtype=o_ref.dtype)
        else:
            # Single pass: var = (sum(x^2) - sum(x)^2 / n) / (n - 1).
            # Slightly less stable than two-pass, but f32 accumulation keeps it
            # well within test tolerance and it halves the VMEM->vreg traffic.
            x = x_ref[...].astype(jnp.float32)
            s1 = jnp.sum(x, axis=1)
            s2 = jnp.sum(x * x, axis=1)
            v = (s2 - s1 * s1 * jnp.float32(1.0 / n_ch)) * jnp.float32(1.0 / (n_ch - 1))
            o_ref[...] = v.astype(o_ref.dtype)
    else:
        raise ValueError(f"bad mode {mode}")


def _channelwise_conv_kernel(x_ref, w_ref, b_ref, o_ref):
    """1x1 conv C->1 == weighted channel sum + bias, accumulated in f32.
    x_ref: (TILE_N, C, TILE_HW); w_ref: (1, C, 1) f32; b_ref: (1, 1) f32;
    o_ref: (TILE_N, TILE_HW).
    Kept as VALU mul + sublane sum (no MXU): the kernel is HBM-bound on every
    generation, so an MXU matvec would only rebalance issue slots."""
    x = x_ref[...].astype(jnp.float32)
    w = w_ref[...]                       # broadcasts over batch and lanes
    o_ref[...] = (jnp.sum(x * w, axis=1) + b_ref[...]).astype(o_ref.dtype)


# ---------------------------------------------------------------------------
# Wrapper
# ---------------------------------------------------------------------------
def channel_axis_pool(x, pool="channelwise_conv", conv_weight=None, conv_bias=None):
    """x: (N, C, H, W) NCHW.  Returns (N, 1, H, W) (keepdim=True)."""
    assert pool in ("avg", "max", "var", "channelwise_conv")
    N, C, H, W = x.shape
    HW = H * W
    x3 = x.reshape(N, C, HW)
    itemsize = jnp.dtype(x.dtype).itemsize

    tile_n, tile_hw, vmem_limit = _plan(pool, N, C, HW, itemsize)
    # Spatial axis first so the leading parallel grid axis (split across
    # v7x's two TensorCores) has extent > 1 even when the batch fits in one tile.
    grid = (pl.cdiv(HW, tile_hw), pl.cdiv(N, tile_n))

    in_spec_x = pl.BlockSpec((tile_n, C, tile_hw), lambda h, n: (n, 0, h))
    out_spec = pl.BlockSpec((tile_n, tile_hw), lambda h, n: (n, h))
    out_shape = jax.ShapeDtypeStruct((N, HW), x.dtype)

    cparams = pltpu.CompilerParams(
        dimension_semantics=("parallel", "parallel"),
        vmem_limit_bytes=vmem_limit,
    )
    flops_per_elem = {"avg": 1, "max": 1, "var": 3, "channelwise_conv": 2}[pool]
    cost = pl.CostEstimate(
        flops=flops_per_elem * N * C * HW,
        transcendentals=0,
        bytes_accessed=(N * C * HW + N * HW) * itemsize,
    )

    if pool == "channelwise_conv":
        assert conv_weight is not None and conv_bias is not None
        # torch Conv2d(n_ch, 1, 1): weight (1, C, 1, 1), bias (1,).  The torch
        # module keeps f32 parameters, so weights/bias stay f32 here too.
        w3 = conv_weight.reshape(1, C, 1).astype(jnp.float32)
        b2 = conv_bias.reshape(1, 1).astype(jnp.float32)
        out2 = pl.pallas_call(
            _channelwise_conv_kernel,
            out_shape=out_shape,
            grid_spec=pltpu.PrefetchScalarGridSpec(
                num_scalar_prefetch=0,
                grid=grid,
                in_specs=[
                    in_spec_x,
                    pl.BlockSpec((1, C, 1), lambda h, n: (0, 0, 0)),
                    pl.BlockSpec((1, 1), lambda h, n: (0, 0)),
                ],
                out_specs=out_spec,
            ),
            compiler_params=cparams,
            cost_estimate=cost,
        )(x3, w3, b2)
    else:
        kernel = functools.partial(_reduce_pool_kernel, mode=pool, n_ch=C)
        out2 = pl.pallas_call(
            kernel,
            out_shape=out_shape,
            grid_spec=pltpu.PrefetchScalarGridSpec(
                num_scalar_prefetch=0,
                grid=grid,
                in_specs=[in_spec_x],
                out_specs=out_spec,
            ),
            compiler_params=cparams,
            cost_estimate=cost,
        )(x3)

    return out2.reshape(N, 1, H, W)


# ---------------------------------------------------------------------------
# Reference (plain JAX) for correctness check
# ---------------------------------------------------------------------------
def _reference(x, pool, w=None, b=None):
    if pool == "avg":
        return jnp.mean(x, axis=1, keepdims=True)
    if pool == "max":
        return jnp.max(x, axis=1, keepdims=True)
    if pool == "var":
        return jnp.var(x, axis=1, keepdims=True, ddof=1)
    # channelwise_conv: 1x1 conv C->1
    wc = w.reshape(1, -1, 1, 1)
    return jnp.sum(x * wc, axis=1, keepdims=True) + b.reshape(1, 1, 1, 1)


if __name__ == "__main__":
    key = jax.random.PRNGKey(0)
    kx1, kx2, kw, kb = jax.random.split(key, 4)

    C = 4
    # Shape 1: tiny, single block.  Shape 2: non-multiple-of-128 spatial extent
    # and N > 8, exercising multi-tile grids and masked partial output tiles.
    shapes = [(2, C, 16, 16), (16, C, 24, 20)]
    xs = [
        jax.random.normal(kx1, shapes[0], dtype=jnp.float32),
        jax.random.normal(kx2, shapes[1], dtype=jnp.float32),
    ]

    # Deterministic Conv2d(C, 1, 1) parameters: weight (1, C, 1, 1), bias (1,)
    bound = 1.0 / (C ** 0.5)
    conv_w = jax.random.uniform(kw, (1, C, 1, 1), jnp.float32, -bound, bound)
    conv_b = jax.random.uniform(kb, (1,), jnp.float32, -bound, bound)

    ok = True
    for x in xs:
        N, _, H, W = x.shape
        for mode in ("avg", "max", "var", "channelwise_conv"):
            if mode == "channelwise_conv":
                out = channel_axis_pool(x, mode, conv_w, conv_b)
                ref = _reference(x, mode, conv_w, conv_b)
            else:
                out = channel_axis_pool(x, mode)
                ref = _reference(x, mode)
            out = jax.block_until_ready(out)
            assert out.shape == (N, 1, H, W), (mode, out.shape)
            if not bool(jnp.allclose(out, ref, atol=1e-5, rtol=1e-5)):
                ok = False
                print(f"MISMATCH in mode {mode} shape {x.shape}")

    if ok:
        print("KERNEL_OK")
</pallas_src>

<mosaic_0001>
module attributes {stable_mosaic.version = 11 : i64} {
  func.func @_reduce_pool_kernel(%arg0: i32, %arg1: i32, %arg2: memref<2x4x256xf32, #tpu.memory_space<vmem>>, %arg3: memref<2x256xf32, #tpu.memory_space<vmem>>) attributes {dimension_semantics = [#tpu.dimension_semantics<parallel>, #tpu.dimension_semantics<parallel>], iteration_bounds = array<i64: 1, 1>, scalar_prefetch = 0 : i64, scratch_operands = 0 : i64, tpu.core_type = #tpu.core_type<tc>, window_params = [{transform_indices = @transform_0, window_bounds = array<i64: 2, 4, 256>}, {transform_indices = @transform_1, window_bounds = array<i64: 2, 256>}]} {
    %c0 = arith.constant 0 : index
    %c0_0 = arith.constant 0 : index
    %c0_1 = arith.constant 0 : index
    %0 = vector.load %arg2[%c0, %c0_0, %c0_1] : memref<2x4x256xf32, #tpu.memory_space<vmem>>, vector<2x4x256xf32>
    %cst = arith.constant dense<0.000000e+00> : vector<2x256xf32>
    %1 = vector.multi_reduction <add>, %0, %cst [1] : vector<2x4x256xf32> to vector<2x256xf32>
    %cst_2 = arith.constant 2.500000e-01 : f32
    %2 = vector.broadcast %cst_2 : f32 to vector<2x256xf32>
    %3 = arith.mulf %1, %2 : vector<2x256xf32>
    %c0_3 = arith.constant 0 : index
    %c0_4 = arith.constant 0 : index
    %4 = vector.load %arg3[%c0_3, %c0_4] : memref<2x256xf32, #tpu.memory_space<vmem>>, vector<2x256xf32>
    tpu.vector_store %arg3[%c0_3, %c0_4], %3 {strides = array<i32>} : memref<2x256xf32, #tpu.memory_space<vmem>>, vector<2x256xf32>,
    return
  }
  func.func @transform_0(%arg0: i32, %arg1: i32) -> (i32, i32, i32) {
    %c0_i32 = arith.constant 0 : i32
    %c0_i32_0 = arith.constant 0 : i32
    return %arg1, %c0_i32, %arg0 : i32, i32, i32
  }
  func.func @transform_1(%arg0: i32, %arg1: i32) -> (i32, i32) {
    %c0_i32 = arith.constant 0 : i32
    return %arg1, %arg0 : i32, i32
  }
}

</mosaic_0001>

<bundles_post_ra>
// kernel: tpu_custom_call.1
= control target key start
LH: loop header
LB: loop body
LE: loop exit
PB: predicated region body
PF: predicated region fallthrough
CT: control target
= control target key end

     0   :  { %6 = vsyncpa [#allocation3], 0  ;;  %s190_s0 = inlined_call_operand.hbm [shape: f32[2,4,256], index: 0, kind: input, shape index: {}]   ;;  %s191_s1 = inlined_call_operand.hbm [shape: f32[2,256], index: 1, kind: output, shape index: {}]  }
   0x1   :  { %7 = vsyncpa [#allocation4], 0  ;;  %s12_s8 = sshll.u32 %s190_s0, 4  ;;  %s170_s9 = smov [#allocation2]   ;;  %s13_s8 = int_to_ptr.hbm [resolvable:$true] %s12_s8 }
   0x2   :  { %s14_s10 = sshll.u32 %s170_s9, 4  ;;  %s171_s11 = smov 128   ;;  %s15_s10 = int_to_ptr.vmem [resolvable:$true] %s14_s10 }
   0x3   :  { %s172_s12 = smov 8  }
   0x4   :  { %20 = dma.hbm_to_vmem [thread:$0]  %s13_s8, 256, %s15_s10, [#allocation3], %s171_s11, %s171_s11, %s172_s12  }
   0x5   :  { %166 = dma.done.wait [#allocation3], 256  }
   0x6   :  { %167 = vsyncadd [#allocation3], 4294967040  ;;  %v25_v0 = vld [vmem:[#allocation2] sm:$0xff]  ;;  %v26_v1 = vld [vmem:[#allocation2 + $0x8] sm:$0xff]  ;;  %vm40_vm0 = vcmask 1043456   ;;  %vm79_vm1 = vcmask 1041408  }
   0x7   :  { %29 = vst [vmem:[#allocation1] ss:$2 sm:$0xff] %v25_v0  ;;  %vm87_vm2 = vcmask 1041409   ;;  %vm89_vm3 = vcmask 1043459   ;;  %vm91_vm4 = vcmask 1045509   ;;  %s173_s0 = smov [#allocation5]  }
   0x8   :  { %33 = vst [vmem:[#allocation1 + $0x10] ss:$2 sm:$0xff] %v26_v1  ;;  %s102_s13 = sshll.u32 %s173_s0, 4  ;;  %s104_s16 = sshll.u32 %s191_s1, 4  ;;  %vm93_vm5 = vcmask 1047559   ;;  %s103_s13 = int_to_ptr.vmem [resolvable:$true] %s102_s13  ;;  %s105_s16 = int_to_ptr.hbm [resolvable:$true] %s104_s16 }
   0xe   :  { %v30_v2 = vld.sshfl [vmem:[#allocation1] sm:$0xff pattern:$0x75316420]  ;;  %v31_v3 = vld.sshfl [vmem:[#allocation1 + $0x8] sm:$0xff pattern:$0x75316420] }
   0xf   :  { %v34_v4 = vld.sshfl [vmem:[#allocation1 + $0x10] sm:$0xff pattern:$0x75316420]  ;;  %v35_v5 = vld.sshfl [vmem:[#allocation1 + $0x18] sm:$0xff pattern:$0x75316420] }
  0x10   :  { %v41_v6 = vsel %vm40_vm0, %v30_v2, 0.0  ;;  %v48_v7 = vsel %vm40_vm0, %v31_v3, 0.0  ;;  %v55_v8 = vsel %vm40_vm0, %v34_v4, 0.0  ;;  %v62_v9 = vsel %vm40_vm0, %v35_v5, 0.0 }
  0x11   :  { %v42_v10 = vrot.slane %v41_v6, 4  ;;  %v49_v11 = vrot.slane %v48_v7, 4  ;;  %v56_v12 = vrot.slane %v55_v8, 4  ;;  %v63_v13 = vrot.slane %v62_v9, 4 }
  0x13   :  { %v43_v14 = vadd.f32 %v42_v10, %v41_v6  ;;  %v50_v15 = vadd.f32 %v49_v11, %v48_v7  ;;  %v57_v16 = vadd.f32 %v56_v12, %v55_v8  ;;  %v64_v17 = vadd.f32 %v63_v13, %v62_v9 }
  0x15   :  { %v44_v18 = vrot.slane %v43_v14, 2  ;;  %v51_v19 = vrot.slane %v50_v15, 2  ;;  %v58_v20 = vrot.slane %v57_v16, 2  ;;  %v65_v21 = vrot.slane %v64_v17, 2 }
  0x17   :  { %v45_v22 = vadd.f32 %v44_v18, %v43_v14  ;;  %v52_v23 = vadd.f32 %v51_v19, %v50_v15  ;;  %v59_v24 = vadd.f32 %v58_v20, %v57_v16  ;;  %v66_v25 = vadd.f32 %v65_v21, %v64_v17 }
  0x19   :  { %v46_v26 = vrot.slane %v45_v22, 1  ;;  %v53_v27 = vrot.slane %v52_v23, 1  ;;  %v60_v28 = vrot.slane %v59_v24, 1  ;;  %v67_v29 = vrot.slane %v66_v25, 1 }
  0x1b   :  { %v54_v30 = vadd.f32 %v53_v27, %v52_v23  ;;  %v61_v31 = vadd.f32 %v60_v28, %v59_v24  ;;  %v68_v32 = vadd.f32 %v67_v29, %v66_v25  ;;  %v47_v33 = vadd.f32 %v46_v26, %v45_v22 }
  0x1d   :  { %v70_v34 = vmul.f32 0.25, %v54_v30  ;;  %v72_v35 = vmul.f32 0.25, %v68_v32  ;;  %v71_v36 = vmul.f32 0.25, %v61_v31  ;;  %v69_v39 = vmul.f32 0.25, %v47_v33 }
  0x1f   :  { %v77_v37 = vrot.slane %v70_v34, 6  ;;  %v78_v38 = vrot.slane %v72_v35, 6 }
  0x21   :  { %v81_v40 = vsel %vm79_vm1, %v71_v36, %v78_v38  ;;  %v80_v42 = vsel %vm79_vm1, %v69_v39, %v77_v37 }
  0x22   :  { %v86_v41 = vrot.slane %v81_v40, 7 }
  0x24   :  { %v88_v43 = vsel %vm87_vm2, %v86_v41, %v80_v42 }
  0x25   :  { %v90_v44 = vsel %vm89_vm3, %v86_v41, %v88_v43 }
  0x26   :  { %v92_v45 = vsel %vm91_vm4, %v86_v41, %v90_v44 }
  0x27   :  { %v94_v46 = vsel %vm93_vm5, %v86_v41, %v92_v45 }
  0x28   :  { %96 = vst [vmem:[#allocation5] sm:$0xf] %v94_v46 }
  0x29   :  { %107 = dma.vmem_to_hbm [thread:$0]  %s103_s13, 64, %s105_s16, [#allocation4]  }
  0x2a   :  { %168 = dma.done.wait [#allocation4], 64  }
  0x2b   :  { %169 = vsyncadd [#allocation4], 4294967232 }
  0x2c   :  { %112 = vsyncpa [#allocation3], 1 }
  0x2d   :  { %113 = vsyncpa [#allocation4], 1 }

</bundles_post_ra>
